<compile_context>
chip_gen: v6e
topology: v6e:2x2x1
jax: 0.10.0
libtpu: 0.0.40
codegen_flags: <defaults>
</compile_context>

<pallas_src>
import numpy as np

import jax
import jax.numpy as jnp
from jax import lax
from jax.experimental import pallas as pl
from jax.experimental.pallas import tpu as pltpu


def _round_up(n, m):
    return (n + m - 1) // m * m


def _sublane_rows(dtype):
    # Rows per packed sublane tile: 8 for 4-byte, 16 for 2-byte, 32 for 1-byte.
    return max(8, 32 // jnp.dtype(dtype).itemsize)


def _choose_row_block(H, itemsize, sublane, max_len):
    """Rows per grid step: big enough for DMA efficiency, small enough for VMEM."""
    target_bytes = 2 * 1024 * 1024                 # per in-flight block (x2 buffers)
    rows = (target_bytes // max(1, H * itemsize)) // sublane * sublane
    rows = max(sublane, min(rows, 512))
    rows = min(rows, _round_up(max_len, sublane))  # don't blow up alignment padding
    return max(rows, sublane)


def _cat_repr_kernel(sid_ref, first_ref, last_ref, lastrow_ref, len_ref,
                     x_ref, o_ref, sum_ref):
    """One grid step == one ROW_BLOCK-row block of one packed sequence.

    sid/first/last/lastrow/len : SMEM (G,) int32 scalar-prefetched metadata
    x_ref  : VMEM (ROW_BLOCK, H_TILE) native dtype  -- packed rows, pad rows == 0
    o_ref  : VMEM (1, 3, H_TILE) out dtype          -- [first | mean | last] for seq
    sum_ref: VMEM (1, H_TILE) f32                   -- row-sum accumulator
    """
    g = pl.program_id(1)

    # One load + one f32 upcast per block feeds everything below.
    xf = x_ref[...].astype(jnp.float32)                      # (RB, H_TILE)

    @pl.when(first_ref[g] == 1)
    def _init():
        sum_ref[...] = jnp.zeros_like(sum_ref)
        o_ref[0, 0:1, :] = xf[0:1, :].astype(o_ref.dtype)    # hidden[0]

    # Alignment-pad rows are exact zeros -> plain sum == masked sum.
    sum_ref[...] += jnp.sum(xf, axis=0, keepdims=True)

    @pl.when(last_ref[g] == 1)
    def _finalize():
        inv_len = 1.0 / len_ref[g].astype(jnp.float32)       # exact, once per sequence
        o_ref[0, 1:2, :] = (sum_ref[...] * inv_len).astype(o_ref.dtype)   # mean
        row_ids = lax.broadcasted_iota(jnp.int32, (xf.shape[0], 1), 0)
        sel = (row_ids == lastrow_ref[g]).astype(jnp.float32)
        last = jnp.sum(xf * sel, axis=0, keepdims=True)      # hidden[-1]
        o_ref[0, 2:3, :] = last.astype(o_ref.dtype)


def cat_repr_packed(x_packed, lengths, *, row_block):
    """x_packed: (sum(round_up(L_i, row_block)), H), sequences packed back-to-back,
    each starting at a row_block-aligned offset; alignment-pad rows MUST be zero.
    lengths: static python ints (L_i >= 1).  Returns (N, 3H) in x_packed.dtype."""
    lengths = [int(l) for l in lengths]
    N = len(lengths)
    H = int(x_packed.shape[-1])
    dtype = x_packed.dtype
    RB = int(row_block)

    nblk = [-(-L // RB) for L in lengths]                    # ceil(L / RB), >= 1
    G = int(sum(nblk))
    assert int(x_packed.shape[0]) == G * RB

    # Per-block metadata (host-side numpy; all static).
    sid = np.repeat(np.arange(N, dtype=np.int32), nblk)
    blk_in_seq = np.concatenate([np.arange(n, dtype=np.int32) for n in nblk])
    nblk_rep = np.repeat(np.asarray(nblk, np.int32), nblk)
    is_first = (blk_in_seq == 0).astype(np.int32)
    is_last = (blk_in_seq == nblk_rep - 1).astype(np.int32)
    last_row = np.repeat(np.asarray([(L - 1) % RB for L in lengths], np.int32), nblk)
    seq_len = np.repeat(np.asarray(lengths, np.int32), nblk)

    # Optional lane split so both v7x TensorCores get work on tiny calls.
    if H % 256 == 0 and G <= 256:
        n_h, h_tile = 2, H // 2
    else:
        n_h, h_tile = 1, H

    grid_spec = pltpu.PrefetchScalarGridSpec(
        num_scalar_prefetch=5,
        grid=(n_h, G),
        in_specs=[pl.BlockSpec((RB, h_tile), lambda h, g, *_: (g, h))],
        out_specs=pl.BlockSpec((1, 3, h_tile),
                               lambda h, g, sid_r, *_: (sid_r[g], 0, h)),
        scratch_shapes=[pltpu.VMEM((1, h_tile), jnp.float32)],
    )

    out = pl.pallas_call(
        _cat_repr_kernel,
        out_shape=jax.ShapeDtypeStruct((N, 3, H), dtype),
        grid_spec=grid_spec,
        compiler_params=pltpu.CompilerParams(
            dimension_semantics=("parallel", "arbitrary"),
            vmem_limit_bytes=32 * 1024 * 1024,
        ),
    )(
        jnp.asarray(sid), jnp.asarray(is_first), jnp.asarray(is_last),
        jnp.asarray(last_row), jnp.asarray(seq_len),
        x_packed,
    )

    # (N, 3, H) -> (N, 3H): row n = [first_n | mean_n | last_n]. Free reshape.
    return out.reshape(N, 3 * H)


def cat_repr(seqs, row_block=None):
    """seqs: list of (L_i, H) arrays (L_i >= 1, same H/dtype). Returns (N, 3H)."""
    N = len(seqs)
    assert N >= 1
    H = int(seqs[0].shape[-1])
    dtype = seqs[0].dtype
    lengths = [int(s.shape[0]) for s in seqs]
    assert all(L >= 1 for L in lengths), "empty sequences not supported"
    assert all(int(s.shape[-1]) == H and s.dtype == dtype for s in seqs)

    sub = _sublane_rows(dtype)
    if row_block is None:
        row_block = _choose_row_block(H, jnp.dtype(dtype).itemsize, sub, max(lengths))
    row_block = _round_up(int(row_block), sub)

    # Pack ragged sequences (native dtype, no f32 upcast); zero-pad only up to
    # the per-sequence ROW_BLOCK alignment.
    parts = []
    for s, L in zip(seqs, lengths):
        pad = _round_up(L, row_block) - L
        parts.append(jnp.pad(s, ((0, pad), (0, 0))) if pad else s)
    x_packed = jnp.concatenate(parts, axis=0)

    return cat_repr_packed(x_packed, lengths, row_block=row_block)


def _reference(seqs):
    """Pure-JAX replica of the PyTorch forward (f32 math for comparison)."""
    rows = []
    for h in seqs:
        h32 = h.astype(jnp.float32)
        rows.append(jnp.concatenate(
            [h32[0], jnp.mean(h32, axis=0), h32[-1]], axis=-1)[None, :])
    return jnp.concatenate(rows, axis=0)


if __name__ == "__main__":
    key = jax.random.PRNGKey(0)

    # Case 1: f32, small H; row_block=8 forces multi-block sequences so the
    # cross-block accumulator (init / accumulate / finalize) path is exercised.
    H = 32
    lengths = [20, 3, 11, 8]
    seqs = []
    for L in lengths:
        key, sub = jax.random.split(key)
        seqs.append(jax.random.normal(sub, (L, H), dtype=jnp.float32))
    out = jax.block_until_ready(cat_repr(seqs, row_block=8))
    ref = _reference(seqs)
    assert out.shape == (len(lengths), 3 * H), out.shape
    assert out.dtype == jnp.float32
    assert jnp.allclose(out, ref, atol=1e-5, rtol=1e-5), "f32 mismatch vs reference"

    # Case 2: bf16 streamed natively (no f32 upcast on the wire), f32 accumulation
    # in-kernel, bf16 output (dtype preserved).
    H = 128
    lengths = [33, 16, 9]
    seqs = []
    for L in lengths:
        key, sub = jax.random.split(key)
        seqs.append(jax.random.normal(sub, (L, H), dtype=jnp.float32).astype(jnp.bfloat16))
    out = jax.block_until_ready(cat_repr(seqs))
    ref = _reference(seqs)
    assert out.shape == (len(lengths), 3 * H), out.shape
    assert out.dtype == jnp.bfloat16
    assert jnp.allclose(out.astype(jnp.float32), ref, atol=2e-2, rtol=2e-2), \
        "bf16 mismatch vs reference"

    # Case 3: H % 256 == 0 exercises the 2-way "parallel" H split (v7x megacore).
    H = 256
    lengths = [9, 4]
    seqs = []
    for L in lengths:
        key, sub = jax.random.split(key)
        seqs.append(jax.random.normal(sub, (L, H), dtype=jnp.float32))
    out = jax.block_until_ready(cat_repr(seqs, row_block=8))
    ref = _reference(seqs)
    assert out.shape == (len(lengths), 3 * H), out.shape
    assert jnp.allclose(out, ref, atol=1e-5, rtol=1e-5), "H-split mismatch vs reference"

    print("KERNEL_OK")
</pallas_src>

<mosaic_0001>
module attributes {stable_mosaic.version = 11 : i64} {
  func.func @_cat_repr_kernel(%arg0: i32, %arg1: i32, %arg2: memref<7xi32, #tpu.memory_space<smem>>, %arg3: memref<7xi32, #tpu.memory_space<smem>>, %arg4: memref<7xi32, #tpu.memory_space<smem>>, %arg5: memref<7xi32, #tpu.memory_space<smem>>, %arg6: memref<7xi32, #tpu.memory_space<smem>>, %arg7: memref<8x32xf32, #tpu.memory_space<vmem>>, %arg8: memref<1x3x32xf32, #tpu.memory_space<vmem>>, %arg9: memref<1x32xf32, #tpu.memory_space<vmem>>) attributes {dimension_semantics = [#tpu.dimension_semantics<parallel>, #tpu.dimension_semantics<arbitrary>], iteration_bounds = array<i64: 1, 7>, scalar_prefetch = 5 : i64, scratch_operands = 1 : i64, tpu.core_type = #tpu.core_type<tc>, window_params = [{transform_indices = @transform_0, window_bounds = array<i64: 8, 32>}, {transform_indices = @transform_1, window_bounds = array<i64: 1, 3, 32>}]} {
    %c0 = arith.constant 0 : index
    %c0_0 = arith.constant 0 : index
    %0 = vector.load %arg7[%c0, %c0_0] : memref<8x32xf32, #tpu.memory_space<vmem>>, vector<8x32xf32>
    %1 = arith.index_cast %arg1 : i32 to index
    %2 = memref.load %arg3[%1] : memref<7xi32, #tpu.memory_space<smem>>
    %c1_i32 = arith.constant 1 : i32
    %3 = arith.cmpi eq, %2, %c1_i32 : i32
    %4 = arith.extui %3 : i1 to i32
    %c0_i32 = arith.constant 0 : i32
    %5 = arith.cmpi ne, %4, %c0_i32 : i32
    scf.if %5 {
      %cst_7 = arith.constant 0.000000e+00 : f32
      %16 = vector.broadcast %cst_7 : f32 to vector<1x32xf32>
      %c0_8 = arith.constant 0 : index
      %c0_9 = arith.constant 0 : index
      %17 = vector.load %arg9[%c0_8, %c0_9] : memref<1x32xf32, #tpu.memory_space<vmem>>, vector<1x32xf32>
      tpu.vector_store %arg9[%c0_8, %c0_9], %16 {strides = array<i32>} : memref<1x32xf32, #tpu.memory_space<vmem>>, vector<1x32xf32>,
      %18 = vector.extract_strided_slice %0 {offsets = [0, 0], sizes = [1, 32], strides = [1, 1]} : vector<8x32xf32> to vector<1x32xf32>
      %c0_10 = arith.constant 0 : index
      %c0_11 = arith.constant 0 : index
      %c0_12 = arith.constant 0 : index
      %19 = vector.load %arg8[%c0_10, %c0_11, %c0_12] : memref<1x3x32xf32, #tpu.memory_space<vmem>>, vector<1x1x32xf32>
      %20 = vector.shape_cast %19 : vector<1x1x32xf32> to vector<1x32xf32>
      %21 = vector.shape_cast %18 : vector<1x32xf32> to vector<1x1x32xf32>
      tpu.vector_store %arg8[%c0_10, %c0_11, %c0_12], %21 {strides = array<i32>} : memref<1x3x32xf32, #tpu.memory_space<vmem>>, vector<1x1x32xf32>,
    } else {
    }
    %c0_1 = arith.constant 0 : index
    %c0_2 = arith.constant 0 : index
    %6 = vector.load %arg9[%c0_1, %c0_2] : memref<1x32xf32, #tpu.memory_space<vmem>>, vector<1x32xf32>
    %cst = arith.constant dense<0.000000e+00> : vector<32xf32>
    %7 = vector.multi_reduction <add>, %0, %cst [0] : vector<8x32xf32> to vector<32xf32>
    %8 = vector.shape_cast %7 : vector<32xf32> to vector<1x32xf32>
    %9 = arith.addf %6, %8 : vector<1x32xf32>
    %c0_3 = arith.constant 0 : index
    %c0_4 = arith.constant 0 : index
    %10 = vector.load %arg9[%c0_3, %c0_4] : memref<1x32xf32, #tpu.memory_space<vmem>>, vector<1x32xf32>
    tpu.vector_store %arg9[%c0_3, %c0_4], %9 {strides = array<i32>} : memref<1x32xf32, #tpu.memory_space<vmem>>, vector<1x32xf32>,
    %11 = arith.index_cast %arg1 : i32 to index
    %12 = memref.load %arg4[%11] : memref<7xi32, #tpu.memory_space<smem>>
    %c1_i32_5 = arith.constant 1 : i32
    %13 = arith.cmpi eq, %12, %c1_i32_5 : i32
    %14 = arith.extui %13 : i1 to i32
    %c0_i32_6 = arith.constant 0 : i32
    %15 = arith.cmpi ne, %14, %c0_i32_6 : i32
    scf.if %15 {
      %16 = arith.index_cast %arg1 : i32 to index
      %17 = memref.load %arg6[%16] : memref<7xi32, #tpu.memory_space<smem>>
      %18 = arith.sitofp %17 : i32 to f32
      %cst_7 = arith.constant 1.000000e+00 : f32
      %19 = arith.divf %cst_7, %18 : f32
      %c0_8 = arith.constant 0 : index
      %c0_9 = arith.constant 0 : index
      %20 = vector.load %arg9[%c0_8, %c0_9] : memref<1x32xf32, #tpu.memory_space<vmem>>, vector<1x32xf32>
      %21 = vector.broadcast %19 : f32 to vector<1x32xf32>
      %22 = arith.mulf %20, %21 : vector<1x32xf32>
      %c0_10 = arith.constant 0 : index
      %c1 = arith.constant 1 : index
      %c0_11 = arith.constant 0 : index
      %23 = vector.load %arg8[%c0_10, %c1, %c0_11] : memref<1x3x32xf32, #tpu.memory_space<vmem>>, vector<1x1x32xf32>
      %24 = vector.shape_cast %23 : vector<1x1x32xf32> to vector<1x32xf32>
      %25 = vector.shape_cast %22 : vector<1x32xf32> to vector<1x1x32xf32>
      tpu.vector_store %arg8[%c0_10, %c1, %c0_11], %25 {strides = array<i32>} : memref<1x3x32xf32, #tpu.memory_space<vmem>>, vector<1x1x32xf32>,
      %26 = tpu.iota {dimensions = array<i32: 0>} : vector<8x1xi32>
      %27 = arith.index_cast %arg1 : i32 to index
      %28 = memref.load %arg5[%27] : memref<7xi32, #tpu.memory_space<smem>>
      %29 = vector.broadcast %28 : i32 to vector<8x1xi32>
      %30 = arith.cmpi eq, %26, %29 : vector<8x1xi32>
      %31 = arith.extui %30 : vector<8x1xi1> to vector<8x1xi32>
      %32 = arith.sitofp %31 : vector<8x1xi32> to vector<8x1xf32>
      %33 = vector.broadcast %32 : vector<8x1xf32> to vector<8x32xf32>
      %34 = arith.mulf %0, %33 : vector<8x32xf32>
      %cst_12 = arith.constant dense<0.000000e+00> : vector<32xf32>
      %35 = vector.multi_reduction <add>, %34, %cst_12 [0] : vector<8x32xf32> to vector<32xf32>
      %36 = vector.shape_cast %35 : vector<32xf32> to vector<1x32xf32>
      %c0_13 = arith.constant 0 : index
      %c2 = arith.constant 2 : index
      %c0_14 = arith.constant 0 : index
      %37 = vector.load %arg8[%c0_13, %c2, %c0_14] : memref<1x3x32xf32, #tpu.memory_space<vmem>>, vector<1x1x32xf32>
      %38 = vector.shape_cast %37 : vector<1x1x32xf32> to vector<1x32xf32>
      %39 = vector.shape_cast %36 : vector<1x32xf32> to vector<1x1x32xf32>
      tpu.vector_store %arg8[%c0_13, %c2, %c0_14], %39 {strides = array<i32>} : memref<1x3x32xf32, #tpu.memory_space<vmem>>, vector<1x1x32xf32>,
    } else {
    }
    return
  }
  func.func @transform_0(%arg0: i32, %arg1: i32, %arg2: memref<7xi32, #tpu.memory_space<smem>>, %arg3: memref<7xi32, #tpu.memory_space<smem>>, %arg4: memref<7xi32, #tpu.memory_space<smem>>, %arg5: memref<7xi32, #tpu.memory_space<smem>>, %arg6: memref<7xi32, #tpu.memory_space<smem>>) -> (i32, i32) {
    %c0_i32 = arith.constant 0 : i32
    return %arg1, %arg0 : i32, i32
  }
  func.func @transform_1(%arg0: i32, %arg1: i32, %arg2: memref<7xi32, #tpu.memory_space<smem>>, %arg3: memref<7xi32, #tpu.memory_space<smem>>, %arg4: memref<7xi32, #tpu.memory_space<smem>>, %arg5: memref<7xi32, #tpu.memory_space<smem>>, %arg6: memref<7xi32, #tpu.memory_space<smem>>) -> (i32, i32, i32) {
    %0 = arith.index_cast %arg1 : i32 to index
    %1 = memref.load %arg2[%0] : memref<7xi32, #tpu.memory_space<smem>>
    %c0_i32 = arith.constant 0 : i32
    %c0_i32_0 = arith.constant 0 : i32
    return %1, %c0_i32, %arg0 : i32, i32, i32
  }
}

</mosaic_0001>

<bundles_post_ra>
// kernel: tpu_custom_call.1
= control target key start
LH: loop header
LB: loop body
LE: loop exit
PB: predicated region body
PF: predicated region fallthrough
CT: control target
= control target key end

     0   :  { %s546_s0 = inlined_call_operand.vmem [shape: s32[7], index: 0, kind: input, shape index: {}]   ;;  %s547_s5 = inlined_call_operand.vmem [shape: f32[56,32], index: 5, kind: input, shape index: {}]   ;;  %s548_s6 = inlined_call_operand.vmem [shape: f32[4,3,32], index: 6, kind: output, shape index: {}]   ;;  %s549_s1 = inlined_call_operand.vmem [shape: s32[7], index: 1, kind: input, shape index: {}]   ;;  %s550_s2 = inlined_call_operand.vmem [shape: s32[7], index: 2, kind: input, shape index: {}]   ;;  %s551_s3 = inlined_call_operand.vmem [shape: s32[7], index: 3, kind: input, shape index: {}]   ;;  %s552_s4 = inlined_call_operand.vmem [shape: s32[7], index: 4, kind: input, shape index: {}]  }
   0x1   :  { %s11_s23 = sshll.u32 %s546_s0, 4  ;;  %s15_s26 = sshll.u32 %s549_s1, 4  ;;  %s12_s23 = int_to_ptr.vmem [resolvable:$true] %s11_s23  ;;  %s16_s26 = int_to_ptr.vmem [resolvable:$true] %s15_s26 }
   0x2   :  { %s351_s27 = scalar_lea.vmem %s12_s23, 16  ;;  %p356_p1 = scmp.lt.s32.totalorder %s12_s23, %s12_s23 }
   0x3   :  { %p352_p0 = scmp.ne.s32.totalorder %s12_s23, %s351_s27  ;;  %p357_p2 = scmp.lt.s32.totalorder %s351_s27, %s351_s27 }
   0x5   :  { %p358_p3 = por %p357_p2, %p356_p1 }
   0x7   :  { %p359_p4 = pnand %p358_p3, %p352_p0 }
   0x9   :  { %362 = shalt.err (!%p359_p4)  }
   0xa   :  { %s437_s28 = smov [#allocation4]   ;;  %s363_s29 = scalar_lea.vmem %s16_s26, 16 }
   0xb   :  { %14 = dma.vmem_to_smem %s12_s23, 16, %s437_s28, [#allocation3] }
   0xc   :  { %p364_p5 = scmp.ne.s32.totalorder %s16_s26, %s363_s29  ;;  %p368_p6 = scmp.lt.s32.totalorder %s16_s26, %s16_s26 }
   0xd   :  { %p369_p7 = scmp.lt.s32.totalorder %s363_s29, %s363_s29 }
   0xf   :  { %p370_p8 = por %p369_p7, %p368_p6 }
  0x11   :  { %p371_p9 = pnand %p370_p8, %p364_p5 }
  0x13   :  { %374 = shalt.err (!%p371_p9)  }
  0x14   :  { %s438_s0 = smov [#allocation5]   ;;  %s19_s7 = sshll.u32 %s550_s2, 4  ;;  %s20_s7 = int_to_ptr.vmem [resolvable:$true] %s19_s7 }
  0x15   :  { %18 = dma.vmem_to_smem %s16_s26, 16, %s438_s0, [#allocation3] }
  0x16   :  { %s23_s10 = sshll.u32 %s551_s3, 4  ;;  %s375_s11 = scalar_lea.vmem %s20_s7, 16  ;;  %s24_s10 = int_to_ptr.vmem [resolvable:$true] %s23_s10 }
  0x17   :  { %p376_p10 = scmp.ne.s32.totalorder %s20_s7, %s375_s11  ;;  %p380_p11 = scmp.lt.s32.totalorder %s20_s7, %s20_s7 }
  0x18   :  { %p381_p12 = scmp.lt.s32.totalorder %s375_s11, %s375_s11 }
  0x1a   :  { %p382_p13 = por %p381_p12, %p380_p11 }
  0x1c   :  { %p383_p0 = pnand %p382_p13, %p376_p10 }
  0x1e   :  { %386 = shalt.err (!%p383_p0)  }
  0x1f   :  { %s439_s12 = smov [#allocation6]   ;;  %s387_s13 = scalar_lea.vmem %s24_s10, 16 }
  0x20   :  { %22 = dma.vmem_to_smem %s20_s7, 16, %s439_s12, [#allocation3] }
  0x21   :  { %p388_p1 = scmp.ne.s32.totalorder %s24_s10, %s387_s13  ;;  %p392_p2 = scmp.lt.s32.totalorder %s24_s10, %s24_s10 }
  0x22   :  { %p393_p3 = scmp.lt.s32.totalorder %s387_s13, %s387_s13 }
  0x24   :  { %p394_p4 = por %p393_p3, %p392_p2 }
  0x26   :  { %p395_p5 = pnand %p394_p4, %p388_p1 }
  0x28   :  { %398 = shalt.err (!%p395_p5)  }
  0x29   :  { %s440_s2 = smov [#allocation7]   ;;  %s27_s15 = sshll.u32 %s552_s4, 4  ;;  %s28_s15 = int_to_ptr.vmem [resolvable:$true] %s27_s15 }
  0x2a   :  { %26 = dma.vmem_to_smem %s24_s10, 16, %s440_s2, [#allocation3] }
  0x2b   :  { %s399_s16 = scalar_lea.vmem %s28_s15, 16  ;;  %p404_p7 = scmp.lt.s32.totalorder %s28_s15, %s28_s15 }
  0x2c   :  { %p400_p6 = scmp.ne.s32.totalorder %s28_s15, %s399_s16  ;;  %p405_p8 = scmp.lt.s32.totalorder %s399_s16, %s399_s16 }
  0x2e   :  { %p406_p9 = por %p405_p8, %p404_p7 }
  0x30   :  { %p407_p10 = pnand %p406_p9, %p400_p6 }
  0x32   :  { %410 = shalt.err (!%p407_p10)  }
  0x33   :  { %s441_s17 = smov [#allocation8]  }
  0x34   :  { %30 = dma.vmem_to_smem %s28_s15, 16, %s441_s17, [#allocation3] }
  0x35   :  { %423 = dma.done.wait [#allocation3], 80 }
  0x36   :  { %424 = vsyncadd [#allocation3], 4294967216 }
  0x37   :  { %32 = sfence }
  0x38   :  { %s494_s18 = smov 0   ;;  %s496_s19 = smov 0  }
  0x39   :  { %s498_s20 = smov 0  }
  0x3a LB: > { %s47_s4 = sadd.s32 1, %s431_s19  ;;  %p308_p11 = scmp.ge.s32.totalorder %s435_s20, 1  ;;  %s435_s20 = sphi %s498_s20, %s38_s20   ;;  %s431_s19 = sphi %s496_s19, %s554_s19   ;;  %s427_s18 = sphi %s494_s18, %s553_s18  }
  0x3b   : > { %p48_p12 = scmp.ge.s32.totalorder %s47_s4, 7  ;;  %p134_p13 = scmp.lt.s32.totalorder %s435_s20, 8 }
  0x3d   : > { %s556_s4 = smov (%p48_p12, %s47_s4), 0  ;;  %p135_p0 = pnand %p308_p11, %p134_p13 }
  0x3e   : > { %p159_p1 = scmp.lt.s32.totalorder (!%p135_p0), %s427_s18, 6  ;;  %s166_s21 = sld [smem:[#allocation4 + %s427_s18]] (!%p135_p0) }
  0x3f   : > { %138 = sbr.rel (%p135_p0) target bundleno = 165 (0xa5), region = 24  ;;  %s176_s22 = sld [smem:[#allocation5 + %s427_s18]] (!%p135_p0) }
  0x44   : > { %s160_s23 = scalar_select %p159_p1, %s427_s18, 6 }
  0x45   : > { %p167_p2 = scmp.lt.s32.totalorder %s166_s21, 3  ;;  %p311_p3 = scmp.ne.s32.totalorder %s176_s22, 1 }
  0x46   : > { %s309_s24 = sshll.u32 %s160_s23, 3 }
  0x47   : > { %s165_s27 = scalar_lea.vmem %s547_s5, %s309_s24  ;;  %s558_s21 = smov (!%p167_p2, %s166_s21), 3 }
  0x48   : > { %v175_v0 = vld [vmem:[%s165_s27] sm:$0xff]  ;;  %s310_s28 = sshll.u32 %s558_s21, 2  ;;  %180 = sbr.rel (%p311_p3) target bundleno = 79 (0x4f), region = 28 }
  0x49   : > { %s524_s1 = scalar_lea.vmem %s548_s6, %s310_s28 }
  0x4d   : > { %vm181_vm0 = vcmask 253952   ;;  %v442_v1 = vmov 0.0  }
  0x4e   : > { %182 = vst.msk [vmem:[#allocation2] sm:$0x1] %vm181_vm0, %v442_v1  ;;  %183 = vst.msk [vmem:[%s524_s1] sm:$0x1] %vm181_vm0, %v175_v0 }
  0x4f PF: > { %vm185_vm1 = vcmask 261120   ;;  %s196_s30 = sld [smem:[#allocation6 + %s427_s18]]  ;;  %vm194_vm2 = vcmask 253952  }
  0x50   : > { %v186_v2 = vsel %vm185_vm1, %v175_v0, 0.0 }
  0x51   : > { %v187_v3 = vrot.slane %v186_v2, 4 }
  0x53   : > { %v188_v4 = vadd.f32 %v187_v3, %v186_v2 }
  0x55   : > { %v189_v5 = vrot.slane %v188_v4, 2  ;;  %v184_v8 = vld [vmem:[#allocation2] sm:$0x1]  ;;  %p312_p4 = scmp.ne.s32.totalorder %s196_s30, 1 }
  0x56   : > { %s201_s7 = sld [smem:[#allocation8 + %s427_s18]] (!%p312_p4) }
  0x57   : > { %v190_v6 = vadd.f32 %v189_v5, %v188_v4  ;;  %s212_s8 = sld [smem:[#allocation7 + %s427_s18]] (!%p312_p4) }
  0x59   : > { %v191_v7 = vrot.slane %v190_v6, 1 }
  0x5b   : > { %v192_v9 = vadd.f32 %v191_v7, %v190_v6  ;;  %200 = sbr.rel (%p312_p4) target bundleno = 165 (0xa5), region = 32 }
  0x5c   : > { %s202_s9 = scvt.s32.f32 (!%p312_p4), %s201_s7 }
  0x5d   : > { %v193_v10 = vadd.f32 %v192_v9, %v184_v8 }
  0x5f   : > { %195 = vst.msk [vmem:[#allocation2] sm:$0x1] %vm194_vm2, %v193_v10 }
  0x60   : > { %v210_v11 = vlaneseq  ;;  %v213_v13 = vstv %s212_s8  ;;  %v203_v14 = vstv %s202_s9  ;;  %v443_v15 = vmov 0.0  }
  0x61   : > { %349 = vrcp.f32 %v203_v14 }
  0x62   : > { %v211_v12 = vshrl.u32 %v210_v11, 7 }
  0x64   : > { %vm214_vm3 = vcmp.eq.s32.totalorder %v211_v12, %v213_v13 }
  0x65   : > { %v313_v16 = vsel %vm214_vm3, 1.0, %v443_v15 }
  0x66   : > { %v217_v17 = vmul.f32 %v313_v16, %v175_v0  ;;  %v206_v26 = vld [vmem:[#allocation2] sm:$0x1] }
  0x68   : > { %v218_v18 = vsel %vm185_vm1, %v217_v17, 0.0 }
  0x69   : > { %v219_v19 = vrot.slane %v218_v18, 4 }
  0x6b   : > { %v220_v20 = vadd.f32 %v219_v19, %v218_v18 }
  0x6d   : > { %v221_v21 = vrot.slane %v220_v20, 2 }
  0x6e   : > { %v350_v24 = vpop.eup %349 }
  0x6f   : > { %v222_v22 = vadd.f32 %v221_v21, %v220_v20  ;;  %316 = vpush %v350_v24 }
  0x71   : > { %v223_v23 = vrot.slane %v222_v22, 1 }
  0x73   : > { %v224_v25 = vadd.f32 %v223_v23, %v222_v22 }
  0x75   : > { %225 = vst.msk [vmem:[%s524_s1 + $0x2] sm:$0x1] %vm194_vm2, %v224_v25 }
  0xa0   : > { %s317_s10 = spop %316 }
  0xa1   : > { %v207_v27 = vstv %s317_s10 }
  0xa2   : > { %v208_v28 = vmul.f32 %v207_v27, %v206_v26 }
  0xa4   : > { %209 = vst.msk [vmem:[%s524_s1 + $0x1] sm:$0x1] %vm194_vm2, %v208_v28 }
  0xa5 PF: > { %s38_s20 = sadd.s32 1, %s435_s20   ;;  %s553_s18 = smov %s431_s19 }
  0xa6   : > { %p35_p5 = scmp.ge.s32.totalorder %s38_s20, 9   ;;  %s554_s19 = smov %s556_s4 }
  0xa8   :  { %37 = sbr.rel (!%p35_p5) target bundleno = 58 (0x3a), region = 62 }

</bundles_post_ra>
